<compile_context>
chip_gen: v7x
topology: tpu7x:2x2x1
jax: 0.10.0
libtpu: 0.0.40
codegen_flags: <defaults>
</compile_context>

<pallas_src>
import jax
import jax.numpy as jnp
from jax import lax
from jax.experimental import pallas as pl
from jax.experimental.pallas import tpu as pltpu


# ----------------------------------------------------------------------------
# Fused single-pass kernel: mean -> excitation MLP -> scale, one block per step
# ----------------------------------------------------------------------------
def _se_fused_kernel(x_ref, w1_ref, b1_ref, w2_ref, b2_ref, o_ref):
    # --- squeeze: mean over spatial axis N, f32 accumulation fused into the
    #     reduce (no block-sized f32 temp kept live) ---
    avg = jnp.mean(x_ref[...], axis=-1, dtype=jnp.float32)          # (TB, C)

    # --- excitation MLP, batched over the TB rows, weights pre-transposed ---
    h = jnp.dot(avg, w1_ref[...],
                preferred_element_type=jnp.float32) + b1_ref[...]   # (TB, H)
    h = h * jax.nn.sigmoid(h)                                       # SiLU
    g = jnp.dot(h, w2_ref[...],
                preferred_element_type=jnp.float32) + b2_ref[...]   # (TB, C)
    g = jax.nn.sigmoid(g)                                           # (TB, C)

    # --- scale: re-read the resident VMEM input, multiply in input dtype ---
    o_ref[...] = x_ref[...] * g.astype(o_ref.dtype)[:, :, None]


# ----------------------------------------------------------------------------
# Two-pass fallback kernels (rows too large for a fused block on this part)
# ----------------------------------------------------------------------------
def _make_mean_kernel(n_total, tn):
    has_tail = (n_total % tn) != 0

    def _mean_kernel(x_ref, avg_ref):
        n_idx = pl.program_id(1)

        @pl.when(n_idx == 0)
        def _():
            avg_ref[...] = jnp.zeros_like(avg_ref)

        x = x_ref[...]
        if has_tail:
            # Mask out-of-bounds lanes of the (padded) last N block.
            col = lax.broadcasted_iota(jnp.int32, x.shape, x.ndim - 1) + n_idx * tn
            x = jnp.where(col < n_total, x, jnp.zeros_like(x))
        avg_ref[...] += jnp.sum(x, axis=-1, dtype=jnp.float32)

        @pl.when(n_idx == pl.num_programs(1) - 1)
        def _():
            avg_ref[...] = avg_ref[...] * (1.0 / n_total)

    return _mean_kernel


def _gate_kernel(avg_ref, w1_ref, b1_ref, w2_ref, b2_ref, g_ref):
    h = jnp.dot(avg_ref[...], w1_ref[...],
                preferred_element_type=jnp.float32) + b1_ref[...]
    h = h * jax.nn.sigmoid(h)
    g_ref[...] = jax.nn.sigmoid(
        jnp.dot(h, w2_ref[...], preferred_element_type=jnp.float32) + b2_ref[...])


def _scale_kernel(x_ref, g_ref, o_ref):
    o_ref[...] = x_ref[...] * g_ref[...].astype(o_ref.dtype)[:, :, None]


# ----------------------------------------------------------------------------
# Wrappers
# ----------------------------------------------------------------------------
def _vmem_budget_bytes():
    """~62% of physical VMEM: ~40 MiB on v7x (64 MiB), ~80 MiB on v5e/v6e."""
    try:
        cap = int(pltpu.get_tpu_info().vmem_capacity_bytes)
    except Exception:
        cap = 64 << 20  # conservative default (v7x per-TC VMEM)
    return int(cap * 5 // 8)


def squeeze_excite(x, w1, b1, w2, b2):
    """x: (B, C, N). w1: (C, H), b1: (1, H), w2: (H, C), b2: (1, C).

    Weights are stored pre-transposed so kernels compute avg @ w1 and h @ w2
    directly (no in-kernel transposes).
    """
    B, C, N = x.shape
    H = w1.shape[1]
    itemsize = x.dtype.itemsize

    budget = _vmem_budget_bytes()
    weight_bytes = (C * H + H + H * C + C) * w1.dtype.itemsize
    row_bytes = C * N * itemsize

    # VMEM need of the fused path per batch-row: double-buffered in + out
    # blocks (+25% headroom) plus resident weights.
    usable = budget - 2 * weight_bytes - (1 << 20)
    per_row = int(4 * row_bytes * 1.25)
    tb_vmem = usable // per_row if per_row > 0 else 0

    if tb_vmem < 1:
        # Row slab doesn't fit VMEM on this part -> N-tiled two-pass path.
        return _squeeze_excite_two_pass(x, w1, b1, w2, b2, budget, weight_bytes)

    # Target per-block size: ~4 MiB on 64 MiB parts, ~8 MiB on 128 MiB parts.
    target_block_bytes = (8 << 20) if budget >= (64 << 20) else (4 << 20)
    tb = int(min(B, tb_vmem, max(1, target_block_bytes // row_bytes)))

    # Guarantee >= 2 grid steps so both v7x TensorCores stream HBM.
    if B >= 2 and pl.cdiv(B, tb) < 2:
        tb = pl.cdiv(B, 2)

    # Prefer a tb that evenly divides B (no wasted tail work), if cheap.
    if B % tb != 0:
        d = tb
        while d > 1 and B % d != 0:
            d -= 1
        if d >= max(1, tb // 2):
            tb = d

    grid = pl.cdiv(B, tb)
    block_bytes = tb * row_bytes
    vmem_limit = int(min(budget,
                         max(16 << 20,
                             int(4 * block_bytes * 1.25)
                             + 2 * weight_bytes + (2 << 20))))

    return pl.pallas_call(
        _se_fused_kernel,
        out_shape=jax.ShapeDtypeStruct((B, C, N), x.dtype),
        grid_spec=pltpu.PrefetchScalarGridSpec(
            num_scalar_prefetch=0,
            grid=(grid,),
            in_specs=[
                pl.BlockSpec((tb, C, N), lambda b: (b, 0, 0)),
                pl.BlockSpec((C, H), lambda b: (0, 0)),   # resident weights
                pl.BlockSpec((1, H), lambda b: (0, 0)),
                pl.BlockSpec((H, C), lambda b: (0, 0)),
                pl.BlockSpec((1, C), lambda b: (0, 0)),
            ],
            out_specs=pl.BlockSpec((tb, C, N), lambda b: (b, 0, 0)),
        ),
        compiler_params=pltpu.CompilerParams(
            dimension_semantics=("parallel",),
            vmem_limit_bytes=vmem_limit,
        ),
    )(x, w1, b1, w2, b2)


def _squeeze_excite_two_pass(x, w1, b1, w2, b2, budget, weight_bytes):
    """Fallback for rows whose (C, N) slab exceeds the VMEM block budget."""
    B, C, N = x.shape
    H = w1.shape[1]
    itemsize = x.dtype.itemsize

    tb = B if B <= 8 else 8                      # sublane-friendly batch block
    denom = max(1, int(4 * tb * C * itemsize * 1.25))
    tn_cap = max(1, (budget - (4 << 20)) // denom)
    tn = min(N, max(128, (tn_cap // 128) * 128))
    grid_b = pl.cdiv(B, tb)
    grid_n = pl.cdiv(N, tn)

    block_bytes = tb * C * tn * itemsize
    vmem_limit = int(min(budget,
                         max(16 << 20, int(4 * block_bytes * 1.25) + (4 << 20))))

    # Pass 1: per-(B, C) mean, accumulated across the N grid axis.
    avg = pl.pallas_call(
        _make_mean_kernel(N, tn),
        out_shape=jax.ShapeDtypeStruct((B, C), jnp.float32),
        grid_spec=pltpu.PrefetchScalarGridSpec(
            num_scalar_prefetch=0,
            grid=(grid_b, grid_n),
            in_specs=[pl.BlockSpec((tb, C, tn), lambda b, n: (b, 0, n))],
            out_specs=pl.BlockSpec((tb, C), lambda b, n: (b, 0)),
        ),
        compiler_params=pltpu.CompilerParams(
            dimension_semantics=("parallel", "arbitrary"),
            vmem_limit_bytes=vmem_limit,
        ),
    )(x)

    # Pass 2: tiny excitation MLP on the (B, C) means.
    gate = pl.pallas_call(
        _gate_kernel,
        out_shape=jax.ShapeDtypeStruct((B, C), jnp.float32),
        grid_spec=pltpu.PrefetchScalarGridSpec(
            num_scalar_prefetch=0,
            grid=(1,),
            in_specs=[
                pl.BlockSpec((B, C), lambda i: (0, 0)),
                pl.BlockSpec((C, H), lambda i: (0, 0)),
                pl.BlockSpec((1, H), lambda i: (0, 0)),
                pl.BlockSpec((H, C), lambda i: (0, 0)),
                pl.BlockSpec((1, C), lambda i: (0, 0)),
            ],
            out_specs=pl.BlockSpec((B, C), lambda i: (0, 0)),
        ),
        compiler_params=pltpu.CompilerParams(
            dimension_semantics=("arbitrary",),
            vmem_limit_bytes=int(budget),
        ),
    )(avg, w1, b1, w2, b2)

    # Pass 3: stream x again and apply the resident gate.
    return pl.pallas_call(
        _scale_kernel,
        out_shape=jax.ShapeDtypeStruct((B, C, N), x.dtype),
        grid_spec=pltpu.PrefetchScalarGridSpec(
            num_scalar_prefetch=0,
            grid=(grid_b, grid_n),
            in_specs=[
                pl.BlockSpec((tb, C, tn), lambda b, n: (b, 0, n)),
                pl.BlockSpec((tb, C), lambda b, n: (b, 0)),
            ],
            out_specs=pl.BlockSpec((tb, C, tn), lambda b, n: (b, 0, n)),
        ),
        compiler_params=pltpu.CompilerParams(
            dimension_semantics=("parallel", "parallel"),
            vmem_limit_bytes=vmem_limit,
        ),
    )(x, gate)


def reference(x, w1, b1, w2, b2):
    avg = jnp.mean(x, axis=-1)                      # (B, C)
    h = avg @ w1 + b1                               # (B, H)
    h = h * jax.nn.sigmoid(h)                       # SiLU
    g = jax.nn.sigmoid(h @ w2 + b2)                 # (B, C)
    return x * g[..., None]


if __name__ == "__main__":
    # Module config: dim = C = 4, reduction_factor = 4, min_dim = 16
    #   -> dim_inner = max(4 // 4, 16) = 16
    B, C, N = 2, 4, 16
    H = max(C // 4, 16)

    key = jax.random.PRNGKey(0)
    kx, k1, k2, k3, k4 = jax.random.split(key, 5)

    x = jax.random.normal(kx, (B, C, N), dtype=jnp.float32)

    # Deterministic PyTorch-Linear-style init (uniform +/- 1/sqrt(fan_in)),
    # stored pre-transposed for the kernel.
    lim1 = 1.0 / jnp.sqrt(C)
    lim2 = 1.0 / jnp.sqrt(H)
    w1 = jax.random.uniform(k1, (C, H), jnp.float32, -lim1, lim1)
    b1 = jax.random.uniform(k2, (1, H), jnp.float32, -lim1, lim1)
    w2 = jax.random.uniform(k3, (H, C), jnp.float32, -lim2, lim2)
    b2 = jax.random.uniform(k4, (1, C), jnp.float32, -lim2, lim2)

    out = jax.block_until_ready(squeeze_excite(x, w1, b1, w2, b2))
    ref = reference(x, w1, b1, w2, b2)

    assert out.shape == (B, C, N)
    assert jnp.allclose(out, ref, atol=1e-5, rtol=1e-5), "mismatch vs reference"

    print("KERNEL_OK")
</pallas_src>

<mosaic_0001>
module attributes {stable_mosaic.version = 11 : i64} {
  func.func @_se_fused_kernel(%arg0: i32, %arg1: memref<1x4x16xf32, #tpu.memory_space<vmem>>, %arg2: memref<4x16xf32, #tpu.memory_space<vmem>>, %arg3: memref<1x16xf32, #tpu.memory_space<vmem>>, %arg4: memref<16x4xf32, #tpu.memory_space<vmem>>, %arg5: memref<1x4xf32, #tpu.memory_space<vmem>>, %arg6: memref<1x4x16xf32, #tpu.memory_space<vmem>>) attributes {dimension_semantics = [#tpu.dimension_semantics<parallel>], iteration_bounds = array<i64: 2>, scalar_prefetch = 0 : i64, scratch_operands = 0 : i64, tpu.core_type = #tpu.core_type<tc>, window_params = [{transform_indices = @transform_0, window_bounds = array<i64: 1, 4, 16>}, {pipeline_mode = #tpu.pipeline_mode<synchronous>, transform_indices = @transform_1, window_bounds = array<i64: 4, 16>}, {pipeline_mode = #tpu.pipeline_mode<synchronous>, transform_indices = @transform_2, window_bounds = array<i64: 1, 16>}, {pipeline_mode = #tpu.pipeline_mode<synchronous>, transform_indices = @transform_3, window_bounds = array<i64: 16, 4>}, {pipeline_mode = #tpu.pipeline_mode<synchronous>, transform_indices = @transform_4, window_bounds = array<i64: 1, 4>}, {transform_indices = @transform_5, window_bounds = array<i64: 1, 4, 16>}]} {
    %c0 = arith.constant 0 : index
    %c0_0 = arith.constant 0 : index
    %c0_1 = arith.constant 0 : index
    %0 = vector.load %arg1[%c0, %c0_0, %c0_1] : memref<1x4x16xf32, #tpu.memory_space<vmem>>, vector<1x4x16xf32>
    %cst = arith.constant dense<0.000000e+00> : vector<1x4xf32>
    %1 = vector.multi_reduction <add>, %0, %cst [2] : vector<1x4x16xf32> to vector<1x4xf32>
    %cst_2 = arith.constant 1.600000e+01 : f32
    %2 = vector.broadcast %cst_2 : f32 to vector<1x4xf32>
    %3 = arith.divf %1, %2 : vector<1x4xf32>
    %c0_3 = arith.constant 0 : index
    %c0_4 = arith.constant 0 : index
    %4 = vector.load %arg2[%c0_3, %c0_4] : memref<4x16xf32, #tpu.memory_space<vmem>>, vector<4x16xf32>
    %cst_5 = arith.constant dense<0.000000e+00> : vector<1x16xf32>
    %5 = tpu.matmul %3, %4, %cst_5 {dimension_numbers = #tpu.dot_dimension_numbers<[1], [0], [0], [1], [0, 0, 1, 1], [], []>} : vector<1x4xf32>, vector<4x16xf32>, vector<1x16xf32> -> vector<1x16xf32>
    %c0_6 = arith.constant 0 : index
    %c0_7 = arith.constant 0 : index
    %6 = vector.load %arg3[%c0_6, %c0_7] : memref<1x16xf32, #tpu.memory_space<vmem>>, vector<1x16xf32>
    %7 = arith.addf %5, %6 : vector<1x16xf32>
    %8 = arith.negf %7 : vector<1x16xf32>
    %9 = math.exp %8 : vector<1x16xf32>
    %cst_8 = arith.constant 1.000000e+00 : f32
    %10 = vector.broadcast %cst_8 : f32 to vector<1x16xf32>
    %11 = arith.addf %10, %9 : vector<1x16xf32>
    %12 = arith.divf %10, %11 : vector<1x16xf32>
    %13 = arith.mulf %7, %12 : vector<1x16xf32>
    %c0_9 = arith.constant 0 : index
    %c0_10 = arith.constant 0 : index
    %14 = vector.load %arg4[%c0_9, %c0_10] : memref<16x4xf32, #tpu.memory_space<vmem>>, vector<16x4xf32>
    %cst_11 = arith.constant dense<0.000000e+00> : vector<1x4xf32>
    %15 = tpu.matmul %13, %14, %cst_11 {dimension_numbers = #tpu.dot_dimension_numbers<[1], [0], [0], [1], [0, 0, 1, 1], [], []>} : vector<1x16xf32>, vector<16x4xf32>, vector<1x4xf32> -> vector<1x4xf32>
    %c0_12 = arith.constant 0 : index
    %c0_13 = arith.constant 0 : index
    %16 = vector.load %arg5[%c0_12, %c0_13] : memref<1x4xf32, #tpu.memory_space<vmem>>, vector<1x4xf32>
    %17 = arith.addf %15, %16 : vector<1x4xf32>
    %18 = arith.negf %17 : vector<1x4xf32>
    %19 = math.exp %18 : vector<1x4xf32>
    %cst_14 = arith.constant 1.000000e+00 : f32
    %20 = vector.broadcast %cst_14 : f32 to vector<1x4xf32>
    %21 = arith.addf %20, %19 : vector<1x4xf32>
    %22 = arith.divf %20, %21 : vector<1x4xf32>
    %c0_15 = arith.constant 0 : index
    %c0_16 = arith.constant 0 : index
    %c0_17 = arith.constant 0 : index
    %23 = vector.load %arg1[%c0_15, %c0_16, %c0_17] : memref<1x4x16xf32, #tpu.memory_space<vmem>>, vector<1x4x16xf32>
    %24 = vector.shape_cast %22 : vector<1x4xf32> to vector<1x4x1xf32>
    %25 = vector.broadcast %24 : vector<1x4x1xf32> to vector<1x4x16xf32>
    %26 = arith.mulf %23, %25 : vector<1x4x16xf32>
    %c0_18 = arith.constant 0 : index
    %c0_19 = arith.constant 0 : index
    %c0_20 = arith.constant 0 : index
    %27 = vector.load %arg6[%c0_18, %c0_19, %c0_20] : memref<1x4x16xf32, #tpu.memory_space<vmem>>, vector<1x4x16xf32>
    tpu.vector_store %arg6[%c0_18, %c0_19, %c0_20], %26 {strides = array<i32>} : memref<1x4x16xf32, #tpu.memory_space<vmem>>, vector<1x4x16xf32>,
    return
  }
  func.func @transform_0(%arg0: i32) -> (i32, i32, i32) {
    %c0_i32 = arith.constant 0 : i32
    %c0_i32_0 = arith.constant 0 : i32
    %c0_i32_1 = arith.constant 0 : i32
    return %arg0, %c0_i32, %c0_i32_0 : i32, i32, i32
  }
  func.func @transform_1(%arg0: i32) -> (i32, i32) {
    %c0_i32 = arith.constant 0 : i32
    %c0_i32_0 = arith.constant 0 : i32
    %c0_i32_1 = arith.constant 0 : i32
    return %c0_i32, %c0_i32_0 : i32, i32
  }
  func.func @transform_2(%arg0: i32) -> (i32, i32) {
    %c0_i32 = arith.constant 0 : i32
    %c0_i32_0 = arith.constant 0 : i32
    %c0_i32_1 = arith.constant 0 : i32
    return %c0_i32, %c0_i32_0 : i32, i32
  }
  func.func @transform_3(%arg0: i32) -> (i32, i32) {
    %c0_i32 = arith.constant 0 : i32
    %c0_i32_0 = arith.constant 0 : i32
    %c0_i32_1 = arith.constant 0 : i32
    return %c0_i32, %c0_i32_0 : i32, i32
  }
  func.func @transform_4(%arg0: i32) -> (i32, i32) {
    %c0_i32 = arith.constant 0 : i32
    %c0_i32_0 = arith.constant 0 : i32
    %c0_i32_1 = arith.constant 0 : i32
    return %c0_i32, %c0_i32_0 : i32, i32
  }
  func.func @transform_5(%arg0: i32) -> (i32, i32, i32) {
    %c0_i32 = arith.constant 0 : i32
    %c0_i32_0 = arith.constant 0 : i32
    %c0_i32_1 = arith.constant 0 : i32
    return %arg0, %c0_i32, %c0_i32_0 : i32, i32, i32
  }
}

</mosaic_0001>

<bundles_post_ra>
// kernel: tpu_custom_call.1
= control target key start
LH: loop header
LB: loop body
LE: loop exit
PB: predicated region body
PF: predicated region fallthrough
CT: control target
= control target key end

     0   :  { %10 = vsyncpa [#allocation3], 0  ;;  %s785_s0 = inlined_call_operand.vmem [shape: f32[2,4,16], index: 0, kind: input, shape index: {}]   ;;  %s786_s1 = inlined_call_operand.vmem [shape: f32[4,16], index: 1, kind: input, shape index: {}]   ;;  %s787_s2 = inlined_call_operand.vmem [shape: f32[1,16], index: 2, kind: input, shape index: {}]   ;;  %s788_s3 = inlined_call_operand.vmem [shape: f32[16,4], index: 3, kind: input, shape index: {}]   ;;  %s789_s4 = inlined_call_operand.vmem [shape: f32[1,4], index: 4, kind: input, shape index: {}]   ;;  %s790_s5 = inlined_call_operand.hbm [shape: f32[2,4,16], index: 5, kind: output, shape index: {}]  }
   0x1   :  { %12 = vsyncpa [#allocation3 + $0x1], 0  ;;  %s668_s18 = smov 0   ;;  %s670_s19 = smov 0  }
   0x2   :  { %s672_s20 = smov 0   ;;  %s674_s21 = smov 0  }
   0x3 LB: > { %s689_s22 = sadd.s32 4294967295, %s632_s21   ;;  %s485_s23 = sadd.s32 4294967294, %s632_s21   ;;  %s632_s21 = sphi %s674_s21, %s796_s21   ;;  %s628_s20 = sphi %s672_s20, %s795_s20   ;;  %s624_s19 = sphi %s670_s19, %s794_s19   ;;  %s620_s18 = sphi %s668_s18, %s793_s18  }
   0x4   : > { %s693_s24 = sadd.s32 1, %s632_s21   ;;  %s135_s25 = sadd.s32 1, %s628_s20 }
   0x5   : > { %s132_s26 = ssub.s32 %s632_s21, %s693_s24  ;;  %p145_p0 = scmp.ne.s32.totalorder %s628_s20, %s624_s19 }
   0x6   : > { %p133_p1 = scmp.eq.s32.totalorder %s132_s26, 0  ;;  %p146_p2 = scmp.eq.s32.totalorder %s689_s22, 1 }
   0x7   : > { %p151_p3 = scmp.ne.s32.totalorder %s624_s19, %s620_s18  ;;  %p152_p4 = scmp.eq.s32.totalorder %s485_s23, 1 }
   0x8   : > { %s704_s27 = scalar_select %p133_p1, %s628_s20, %s135_s25  }
   0x9   : > { %p706_p5 = por %p146_p2, %p145_p0  ;;  %p710_p6 = por %p152_p4, %p151_p3 }
   0xa   : > { %p488_p7 = scmp.ge.s32.totalorder %s632_s21, 1  ;;  %p189_p8 = scmp.lt.s32.totalorder %s632_s21, 3 }
   0xc   : > { %p190_p9 = pnand %p488_p7, %p189_p8 }
   0xd   : > { %p216_p10 = scmp.lt.s32.totalorder (!%p190_p9), %s689_s22, 1  ;;  %vm221_vm0 = vcmask (!%p190_p9), 125952   ;;  %v634_v2 = vmov (!%p190_p9), 0.0   ;;  %v227_v3 = vld [vmem:[%s786_s1] sm:$0xf] (!%p190_p9)  ;;  %vm239_vm1 = vcmask (!%p190_p9), 1043456   ;;  %v230_v4 = vlaneseq (!%p190_p9) }
   0xe   : > { %193 = sbr.rel (%p190_p9) target bundleno = 788 (0x314), region = 40  ;;  %505 = vmatprep.subr.mxu0 (!%p190_p9), %v634_v2  ;;  %vm635_vm2 = vmmov (!%p190_p9), 0   ;;  %vm236_vm3 = vcmask (!%p190_p9), 31744   ;;  %v320_v11 = vld [vmem:[%s788_s3] sm:$0xff] (!%p190_p9)  ;;  %v321_v12 = vld [vmem:[%s788_s3 + $0x8] sm:$0xff] (!%p190_p9)  ;;  %v636_v14 = vmov (!%p190_p9), 0.0|0.0  }
   0xf   : > { %506 = vmatpush3.msk.msra.mxu0 (!%p190_p9), %vm239_vm1, %v227_v3  ;;  %507 = vmatprep.mubr.msk.f32.mxu0 (!%p190_p9), %vm635_vm2, %v634_v2  ;;  %v231_v5 = vand.u32 (!%p190_p9), 127, %v230_v4  ;;  %v233_v6 = vshrl.u32 (!%p190_p9), %v230_v4, 7  ;;  %v518_v13 = vpack.c.bf16 (!%p190_p9), %v321_v12, %v320_v11  ;;  %v228_v15 = vld [vmem:[%s787_s2] sm:$0x1] (!%p190_p9)  ;;  %vm323_vm4 = vcmask (!%p190_p9), 130048   ;;  %s213_s26 = sand.u32 (!%p190_p9), 1, %s624_s19  }
  0x10   : > { %514 = vmatprep.mubr.msk.f32.mxu1 (!%p190_p9), %vm635_vm2, %v634_v2  ;;  %517 = vmatprep.subr.bf16.mxu1 (!%p190_p9), %v636_v14  ;;  %v322_v24 = vld [vmem:[%s789_s4] sm:$0x1] (!%p190_p9)  ;;  %s413_s12 = scalar_lea.sflag (!%p190_p9), [#allocation3], %s213_s26 }
  0x11   : > { %v234_v7 = vsub.s32 (!%p190_p9), %v231_v5, %v233_v6  ;;  %519 = vmatpush3.bf16.msra.mxu1 (!%p190_p9), %v518_v13  ;;  %v405_v31 = vsub.s32 (!%p190_p9), 0, %v233_v6 }
  0x15   : > { %s217_s30 = scalar_select %p216_p10, %s689_s22, 1 }
  0x17   : > { %s490_s6 = sshll.u32 %s217_s30, 2  ;;  %s489_s30 = sshll.u32 %s213_s26, 2 }
  0x18   : > { %s219_s9 = scalar_lea.vmem %s785_s0, %s490_s6  ;;  %s497_s6 = sshll.u32 %s689_s22, 6 }
  0x19   : > { %v220_v0 = vld [vmem:[%s219_s9] sm:$0xf]  ;;  %s215_s7 = scalar_lea.vmem [#allocation2], %s489_s30  ;;  %s742_s11 = scalar_lea.hbm %s790_s5, %s497_s6 }
  0x1a   : > { %v222_v1 = vsel %vm221_vm0, %v220_v0, 0.0  ;;  %s426_s8 = sshll.u32 %s215_s7, 4  ;;  %s637_s22 = smov [#allocation2]   ;;  %s744_s8 = int_to_ptr.vmem [resolvable:$true] %s426_s8 }
  0x1b   : > { %223 = vadd.xlane.f32.xlu0 %v222_v1  ;;  %s570_s13 = scalar_lea.vmem %s744_s8, 64  ;;  %s574_s14 = sshll.u32 %s637_s22, 4  ;;  %s575_s14 = int_to_ptr.vmem [resolvable:$false] %s574_s14 }
  0x1c   : > { %p571_p11 = scmp.ne.s32.totalorder %s744_s8, %s570_s13  ;;  %s576_s15 = scalar_lea.vmem %s575_s14, 128 }
  0x1d   : > { %p577_p0 = scmp.lt.s32.totalorder %s744_s8, %s575_s14  ;;  %p578_p1 = scmp.lt.s32.totalorder %s576_s15, %s570_s13 }
  0x1e   : > { %p572_p12 = pnand %p571_p11, %p706_p5 }
  0x1f   : > { %p579_p2 = por %p578_p1, %p577_p0 }
  0x20   : > { %p573_p13 = pneg %p572_p12 }
  0x22   : > { %p580_p3 = pnand %p579_p2, %p573_p13 }
  0xa8   : > { %v224_v8 = vpop.xlane.xlu0 %223 }
  0xa9   : > { %v226_v9 = vmul.f32 0.0625, %v224_v8 }
  0xab   : > { %v235_v10 = vrot.slane %v226_v9, %v234_v7 }
  0xad   : > { %508 = vmatmul.mubr.msk.f32.vlgmr.msra.gmra.mrb[0].mxu0 %vm236_vm3, %v235_v10 }
 0x180   : > { %v309_v16 = vpop.f32.mrb[0].mxu0 }
 0x181   : > { %v310_v17 = vadd.f32 %v309_v16, %v228_v15  ;;  %v509_v18 = vpop.f32.mrb[1].mxu0 }
 0x183   : > { %v493_v19 = vmul.f32 -1.442695, %v310_v17 }
 0x185   : > { %562 = vpow2.f32 %v493_v19 }
 0x18f   : > { %v563_v20 = vpop.eup %562 }
 0x190   : > { %v316_v21 = vadd.f32 1.0, %v563_v20 }
 0x192   : > { %564 = vrcp.f32 %v316_v21 }
 0x19c   : > { %v565_v22 = vpop.eup %564 }
 0x19d   : > { %v319_v23 = vmul.f32 %v565_v22, %v310_v17 }
 0x19f   : > { %515 = vmatmul.mubr.msk.f32.vlgmr.msra.gmra.mrb[0].mxu1 %vm323_vm4, %v319_v23 }
 0x272   : > { %v393_v25 = vpop.f32.mrb[0].mxu1 }
 0x273   : > { %v394_v26 = vadd.f32 %v393_v25, %v322_v24  ;;  %v516_v27 = vpop.f32.mrb[1].mxu1 }
 0x275   : > { %v495_v28 = vmul.f32 -1.442695, %v394_v26 }
 0x277   : > { %566 = vpow2.f32 %v495_v28 }
 0x281   : > { %v567_v29 = vpop.eup %566 }
 0x282   : > { %v400_v30 = vadd.f32 1.0, %v567_v29 }
 0x284   : > { %568 = vrcp.f32 %v400_v30 }
 0x28e   : > { %v569_v32 = vpop.eup %568 }
 0x28f   : > { %v406_v33 = vrot.slane %v569_v32, %v405_v31 }
 0x291   : > { %408 = vbcast.lane.b32.xlu0 %v406_v33, 256 }
 0x303   : > { %v409_v34 = vpop.permute.xlu0 %408 }
 0x304   : > { %v410_v35 = vmul.f32 %v409_v34, %v220_v0 }
 0x306   : > { %411 = vst.msk [vmem:[%s215_s7] sm:$0xf] %vm221_vm0, %v410_v35 }
 0x307   : > { %583 = shalt.err (!%p580_p3)
}
 0x308   : > { %s584_s16 = scalar_lea.hbm %s742_s11, 64  ;;  %s588_s25 = scalar_lea.hbm %s790_s5, 128 }
 0x309   : > { %p585_p4 = scmp.ne.s32.totalorder %s742_s11, %s584_s16  ;;  %p589_p9 = scmp.lt.u32.totalorder %s742_s11, %s790_s5 }
 0x30a   : > { %p590_p10 = scmp.lt.u32.totalorder %s588_s25, %s584_s16  ;;  %p592_p12 = scmp.lt.u32.totalorder %s584_s16, %s742_s11 }
 0x30b   : > { %p586_p7 = pnand %p585_p4, %p706_p5 }
 0x30c   : > { %p591_p11 = por %p590_p10, %p589_p9 }
 0x30d   : > { %p587_p8 = pneg %p586_p7 }
 0x30e   : > { %p593_p13 = por %p592_p12, %p591_p11 }
 0x310   : > { %p594_p0 = pnand %p593_p13, %p587_p8 }
 0x312   : > { %597 = shalt.err (!%p594_p0)
}
 0x313   : > { %520 = dma.vmem_to_hbm [thread:$0]  (%p706_p5), %s744_s8, 64, %s742_s11, %s413_s12  }
 0x314 PF: > { %p526_p1 = scmp.ge.s32.totalorder %s632_s21, 2  ;;  %s438_s6 = sand.u32 1, %s620_s18  }
 0x315   : > { %s439_s7 = scalar_lea.sflag [#allocation3], %s438_s6 }
 0x316   : > { %p523_p2 = pnand %p526_p1, %p710_p6 }
 0x318   : > { %615 = dma.done.wait (!%p523_p2), %s439_s7, 64  }
 0x319   : > { %617 = vsyncadd (!%p523_p2), %s439_s7, 4294967232  ;;  %p15_p3 = scmp.ge.s32.totalorder %s693_s24, 4   ;;  %s793_s18 = smov %s624_s19 }
 0x31a   : > { %s794_s19 = smov %s628_s20  ;;  %s795_s20 = smov %s704_s27 }
 0x31b   : > { %s796_s21 = smov %s693_s24  ;;  %17 = sbr.rel (!%p15_p3) target bundleno = 3 (0x3), region = 75 }
 0x322   :  { %444 = vsyncpa [#allocation3], 1 }
 0x323   :  { %446 = vsyncpa [#allocation3 + $0x1], 1 }

</bundles_post_ra>
